<compile_context>
chip_gen: v7x
topology: tpu7x:2x2x1
jax: 0.10.0
libtpu: 0.0.40
codegen_flags: <defaults>
</compile_context>

<pallas_src>
import jax
import jax.numpy as jnp
from jax.experimental import pallas as pl
from jax.experimental.pallas import tpu as pltpu

INPUT_DIM = 5
OUTPUT_DIM = 3
OUT_PAD = 8            # output lanes stored by the kernel (cols 3..7 are zero)
W4_PAD_N = 128         # layer-4 matmul computed at full lane width, then sliced
HID1, HID2, HID3 = 128, 128, 64


def _round_up(n, m):
    return ((n + m - 1) // m) * m


def dqn_kernel(x_ref,
               w1_ref, b1_ref,
               w2_ref, b2_ref,
               w3_ref, b3_ref,
               w4_ref, b4_ref,
               o_ref):
    # x_ref: (TB, 5) f32. Weights/biases f32, VMEM-resident.
    x = x_ref[...]
    w1 = w1_ref[...]                                   # (5, HID1)

    # Layer 1 (K=5): far too thin to matter on the MXU; do it as 5 broadcast
    # FMAs on the VPU. Avoids any feature-dim padding or tiny-K matmul.
    h = jnp.broadcast_to(b1_ref[...], (x.shape[0], HID1))
    for i in range(INPUT_DIM):
        h = h + x[:, i:i + 1] * w1[i:i + 1, :]
    h = jnp.maximum(h, 0.0)

    # Layers 2-3: MXU matmuls with f32 accumulation, bias + ReLU on the VPU.
    h = jnp.dot(h, w2_ref[...], preferred_element_type=jnp.float32) + b2_ref[...]
    h = jnp.maximum(h, 0.0)
    h = jnp.dot(h, w3_ref[...], preferred_element_type=jnp.float32) + b3_ref[...]
    h = jnp.maximum(h, 0.0)

    # Layer 4: compute at full 128 lanes (free on the MXU; padded weight cols
    # are zero), then lane-slice to OUT_PAD so the HBM store stays narrow.
    y = jnp.dot(h, w4_ref[...], preferred_element_type=jnp.float32)   # (TB, 128)
    o_ref[...] = (y[:, :OUT_PAD] + b4_ref[...]).astype(o_ref.dtype)   # (TB, 8)


def prepare_params(params):
    """Flatten + zero-pad params for the kernel (all f32).

    Input: list of (W (in, out), b (1, out)) f32, i.e. y = x @ W + b, which
    matches PyTorch's x @ W.T + b with W stored (out, in).
    Padded columns of w4/b4 are zero so the padded output lanes are exactly 0
    and are discarded by the wrapper's column trim.
    """
    (w1, b1), (w2, b2), (w3, b3), (w4, b4) = params
    w4p = jnp.zeros((HID3, W4_PAD_N), jnp.float32).at[:, :OUTPUT_DIM].set(w4)
    b4p = jnp.zeros((1, OUT_PAD), jnp.float32).at[:, :OUTPUT_DIM].set(b4)
    flat = [w1, b1, w2, b2, w3, b3, w4p, b4p]
    return [a.astype(jnp.float32) for a in flat]


def dqn_forward(x, params, *, max_block_rows=1024):
    """x: (B, INPUT_DIM) f32; params: list of (W (in, out), b (1, out)) f32."""
    B = x.shape[0]
    flat = prepare_params(params)

    # Batch tile: large enough to amortize per-step overhead, but capped so the
    # grid keeps >= ~4 steps for megacore sharding when B is large; always a
    # multiple of 8 (sublane constraint on the BlockSpec).
    TB = min(max_block_rows, max(8, _round_up(pl.cdiv(B, 4), 8)))
    grid = (pl.cdiv(B, TB),)

    def resident(shape):
        # Full-array block, same block index every grid step -> DMA'd once,
        # stays VMEM-resident across the whole batch loop.
        return pl.BlockSpec(shape, lambda i: (0, 0))

    in_specs = [pl.BlockSpec((TB, INPUT_DIM), lambda i: (i, 0))]
    in_specs += [resident(a.shape) for a in flat]

    out = pl.pallas_call(
        dqn_kernel,
        out_shape=jax.ShapeDtypeStruct((B, OUT_PAD), jnp.float32),
        grid=grid,
        in_specs=in_specs,
        out_specs=pl.BlockSpec((TB, OUT_PAD), lambda i: (i, 0)),
        compiler_params=pltpu.CompilerParams(
            dimension_semantics=("parallel",)),
    )(x.astype(jnp.float32), *flat)

    return out[:, :OUTPUT_DIM]


def init_params(key, input_dim=INPUT_DIM, output_dim=OUTPUT_DIM):
    """Deterministic init mimicking PyTorch nn.Linear default (U(+/- 1/sqrt(fan_in)))."""
    dims = [(input_dim, HID1), (HID1, HID2), (HID2, HID3), (HID3, output_dim)]
    params = []
    for fan_in, fan_out in dims:
        key, kw, kb = jax.random.split(key, 3)
        bound = 1.0 / (fan_in ** 0.5)
        w = jax.random.uniform(kw, (fan_in, fan_out), jnp.float32, -bound, bound)
        b = jax.random.uniform(kb, (1, fan_out), jnp.float32, -bound, bound)
        params.append((w, b))
    return params


def reference_forward(x, params):
    """Plain f32 MLP reference (matches the PyTorch module's math)."""
    h = x.astype(jnp.float32)
    for i, (w, b) in enumerate(params):
        h = jnp.dot(h, w, precision=jax.lax.Precision.HIGHEST) + b
        if i < len(params) - 1:
            h = jnp.maximum(h, 0.0)
    return h


if __name__ == "__main__":
    key = jax.random.PRNGKey(0)
    key, kx = jax.random.split(key)

    # Small case consistent with the module (single grid step).
    B = 8
    x = jax.random.normal(kx, (B, INPUT_DIM), dtype=jnp.float32)
    params = init_params(key, INPUT_DIM, OUTPUT_DIM)

    out = jax.block_until_ready(dqn_forward(x, params))
    ref = reference_forward(x, params)
    assert out.shape == (B, OUTPUT_DIM)
    # f32 end-to-end: typically agrees to ~1e-5; tolerance kept loose as a guard.
    assert jnp.allclose(out, ref, atol=1e-2, rtol=1e-2), float(jnp.max(jnp.abs(out - ref)))

    # Larger batch: multiple grid steps and a partial trailing block (1000 % 256 != 0).
    xb = jax.random.normal(jax.random.PRNGKey(1), (1000, INPUT_DIM), dtype=jnp.float32)
    outb = jax.block_until_ready(dqn_forward(xb, params))
    refb = reference_forward(xb, params)
    assert outb.shape == (1000, OUTPUT_DIM)
    assert jnp.allclose(outb, refb, atol=1e-2, rtol=1e-2), float(jnp.max(jnp.abs(outb - refb)))

    print("KERNEL_OK")
</pallas_src>

<mosaic_0001>
module attributes {stable_mosaic.version = 11 : i64} {
  func.func @dqn_kernel(%arg0: i32, %arg1: memref<8x5xf32, #tpu.memory_space<vmem>>, %arg2: memref<5x128xf32, #tpu.memory_space<vmem>>, %arg3: memref<1x128xf32, #tpu.memory_space<vmem>>, %arg4: memref<128x128xf32, #tpu.memory_space<vmem>>, %arg5: memref<1x128xf32, #tpu.memory_space<vmem>>, %arg6: memref<128x64xf32, #tpu.memory_space<vmem>>, %arg7: memref<1x64xf32, #tpu.memory_space<vmem>>, %arg8: memref<64x128xf32, #tpu.memory_space<vmem>>, %arg9: memref<1x8xf32, #tpu.memory_space<vmem>>, %arg10: memref<8x8xf32, #tpu.memory_space<vmem>>) attributes {dimension_semantics = [#tpu.dimension_semantics<parallel>], iteration_bounds = array<i64: 1>, scalar_prefetch = 0 : i64, scratch_operands = 0 : i64, tpu.core_type = #tpu.core_type<tc>, window_params = [{transform_indices = @transform_0, window_bounds = array<i64: 8, 5>}, {pipeline_mode = #tpu.pipeline_mode<synchronous>, transform_indices = @transform_1, window_bounds = array<i64: 5, 128>}, {pipeline_mode = #tpu.pipeline_mode<synchronous>, transform_indices = @transform_2, window_bounds = array<i64: 1, 128>}, {pipeline_mode = #tpu.pipeline_mode<synchronous>, transform_indices = @transform_3, window_bounds = array<i64: 128, 128>}, {pipeline_mode = #tpu.pipeline_mode<synchronous>, transform_indices = @transform_4, window_bounds = array<i64: 1, 128>}, {pipeline_mode = #tpu.pipeline_mode<synchronous>, transform_indices = @transform_5, window_bounds = array<i64: 128, 64>}, {pipeline_mode = #tpu.pipeline_mode<synchronous>, transform_indices = @transform_6, window_bounds = array<i64: 1, 64>}, {pipeline_mode = #tpu.pipeline_mode<synchronous>, transform_indices = @transform_7, window_bounds = array<i64: 64, 128>}, {pipeline_mode = #tpu.pipeline_mode<synchronous>, transform_indices = @transform_8, window_bounds = array<i64: 1, 8>}, {transform_indices = @transform_9, window_bounds = array<i64: 8, 8>}]} {
    %c0 = arith.constant 0 : index
    %c0_0 = arith.constant 0 : index
    %0 = vector.load %arg1[%c0, %c0_0] : memref<8x5xf32, #tpu.memory_space<vmem>>, vector<8x5xf32>
    %c0_1 = arith.constant 0 : index
    %c0_2 = arith.constant 0 : index
    %1 = vector.load %arg2[%c0_1, %c0_2] : memref<5x128xf32, #tpu.memory_space<vmem>>, vector<5x128xf32>
    %c0_3 = arith.constant 0 : index
    %c0_4 = arith.constant 0 : index
    %2 = vector.load %arg3[%c0_3, %c0_4] : memref<1x128xf32, #tpu.memory_space<vmem>>, vector<1x128xf32>
    %3 = vector.shape_cast %2 : vector<1x128xf32> to vector<1x128xf32>
    %4 = vector.broadcast %3 : vector<1x128xf32> to vector<8x128xf32>
    %5 = vector.extract_strided_slice %0 {offsets = [0, 0], sizes = [8, 1], strides = [1, 1]} : vector<8x5xf32> to vector<8x1xf32>
    %6 = vector.extract_strided_slice %1 {offsets = [0, 0], sizes = [1, 128], strides = [1, 1]} : vector<5x128xf32> to vector<1x128xf32>
    %7 = vector.broadcast %5 : vector<8x1xf32> to vector<8x128xf32>
    %8 = vector.broadcast %6 : vector<1x128xf32> to vector<8x128xf32>
    %9 = arith.mulf %7, %8 : vector<8x128xf32>
    %10 = arith.addf %4, %9 : vector<8x128xf32>
    %11 = vector.extract_strided_slice %0 {offsets = [0, 1], sizes = [8, 1], strides = [1, 1]} : vector<8x5xf32> to vector<8x1xf32>
    %12 = vector.extract_strided_slice %1 {offsets = [1, 0], sizes = [1, 128], strides = [1, 1]} : vector<5x128xf32> to vector<1x128xf32>
    %13 = vector.broadcast %11 : vector<8x1xf32> to vector<8x128xf32>
    %14 = vector.broadcast %12 : vector<1x128xf32> to vector<8x128xf32>
    %15 = arith.mulf %13, %14 : vector<8x128xf32>
    %16 = arith.addf %10, %15 : vector<8x128xf32>
    %17 = vector.extract_strided_slice %0 {offsets = [0, 2], sizes = [8, 1], strides = [1, 1]} : vector<8x5xf32> to vector<8x1xf32>
    %18 = vector.extract_strided_slice %1 {offsets = [2, 0], sizes = [1, 128], strides = [1, 1]} : vector<5x128xf32> to vector<1x128xf32>
    %19 = vector.broadcast %17 : vector<8x1xf32> to vector<8x128xf32>
    %20 = vector.broadcast %18 : vector<1x128xf32> to vector<8x128xf32>
    %21 = arith.mulf %19, %20 : vector<8x128xf32>
    %22 = arith.addf %16, %21 : vector<8x128xf32>
    %23 = vector.extract_strided_slice %0 {offsets = [0, 3], sizes = [8, 1], strides = [1, 1]} : vector<8x5xf32> to vector<8x1xf32>
    %24 = vector.extract_strided_slice %1 {offsets = [3, 0], sizes = [1, 128], strides = [1, 1]} : vector<5x128xf32> to vector<1x128xf32>
    %25 = vector.broadcast %23 : vector<8x1xf32> to vector<8x128xf32>
    %26 = vector.broadcast %24 : vector<1x128xf32> to vector<8x128xf32>
    %27 = arith.mulf %25, %26 : vector<8x128xf32>
    %28 = arith.addf %22, %27 : vector<8x128xf32>
    %29 = vector.extract_strided_slice %0 {offsets = [0, 4], sizes = [8, 1], strides = [1, 1]} : vector<8x5xf32> to vector<8x1xf32>
    %30 = vector.extract_strided_slice %1 {offsets = [4, 0], sizes = [1, 128], strides = [1, 1]} : vector<5x128xf32> to vector<1x128xf32>
    %31 = vector.broadcast %29 : vector<8x1xf32> to vector<8x128xf32>
    %32 = vector.broadcast %30 : vector<1x128xf32> to vector<8x128xf32>
    %33 = arith.mulf %31, %32 : vector<8x128xf32>
    %34 = arith.addf %28, %33 : vector<8x128xf32>
    %cst = arith.constant 0.000000e+00 : f32
    %35 = vector.broadcast %cst : f32 to vector<8x128xf32>
    %36 = arith.maximumf %34, %35 : vector<8x128xf32>
    %c0_5 = arith.constant 0 : index
    %c0_6 = arith.constant 0 : index
    %37 = vector.load %arg4[%c0_5, %c0_6] : memref<128x128xf32, #tpu.memory_space<vmem>>, vector<128x128xf32>
    %cst_7 = arith.constant dense<0.000000e+00> : vector<8x128xf32>
    %38 = tpu.matmul %36, %37, %cst_7 {dimension_numbers = #tpu.dot_dimension_numbers<[1], [0], [0], [1], [0, 0, 1, 1], [], []>} : vector<8x128xf32>, vector<128x128xf32>, vector<8x128xf32> -> vector<8x128xf32>
    %c0_8 = arith.constant 0 : index
    %c0_9 = arith.constant 0 : index
    %39 = vector.load %arg5[%c0_8, %c0_9] : memref<1x128xf32, #tpu.memory_space<vmem>>, vector<1x128xf32>
    %40 = vector.broadcast %39 : vector<1x128xf32> to vector<8x128xf32>
    %41 = arith.addf %38, %40 : vector<8x128xf32>
    %cst_10 = arith.constant 0.000000e+00 : f32
    %42 = vector.broadcast %cst_10 : f32 to vector<8x128xf32>
    %43 = arith.maximumf %41, %42 : vector<8x128xf32>
    %c0_11 = arith.constant 0 : index
    %c0_12 = arith.constant 0 : index
    %44 = vector.load %arg6[%c0_11, %c0_12] : memref<128x64xf32, #tpu.memory_space<vmem>>, vector<128x64xf32>
    %cst_13 = arith.constant dense<0.000000e+00> : vector<8x64xf32>
    %45 = tpu.matmul %43, %44, %cst_13 {dimension_numbers = #tpu.dot_dimension_numbers<[1], [0], [0], [1], [0, 0, 1, 1], [], []>} : vector<8x128xf32>, vector<128x64xf32>, vector<8x64xf32> -> vector<8x64xf32>
    %c0_14 = arith.constant 0 : index
    %c0_15 = arith.constant 0 : index
    %46 = vector.load %arg7[%c0_14, %c0_15] : memref<1x64xf32, #tpu.memory_space<vmem>>, vector<1x64xf32>
    %47 = vector.broadcast %46 : vector<1x64xf32> to vector<8x64xf32>
    %48 = arith.addf %45, %47 : vector<8x64xf32>
    %cst_16 = arith.constant 0.000000e+00 : f32
    %49 = vector.broadcast %cst_16 : f32 to vector<8x64xf32>
    %50 = arith.maximumf %48, %49 : vector<8x64xf32>
    %c0_17 = arith.constant 0 : index
    %c0_18 = arith.constant 0 : index
    %51 = vector.load %arg8[%c0_17, %c0_18] : memref<64x128xf32, #tpu.memory_space<vmem>>, vector<64x128xf32>
    %cst_19 = arith.constant dense<0.000000e+00> : vector<8x128xf32>
    %52 = tpu.matmul %50, %51, %cst_19 {dimension_numbers = #tpu.dot_dimension_numbers<[1], [0], [0], [1], [0, 0, 1, 1], [], []>} : vector<8x64xf32>, vector<64x128xf32>, vector<8x128xf32> -> vector<8x128xf32>
    %53 = vector.extract_strided_slice %52 {offsets = [0, 0], sizes = [8, 8], strides = [1, 1]} : vector<8x128xf32> to vector<8x8xf32>
    %c0_20 = arith.constant 0 : index
    %c0_21 = arith.constant 0 : index
    %54 = vector.load %arg9[%c0_20, %c0_21] : memref<1x8xf32, #tpu.memory_space<vmem>>, vector<1x8xf32>
    %55 = vector.broadcast %54 : vector<1x8xf32> to vector<8x8xf32>
    %56 = arith.addf %53, %55 : vector<8x8xf32>
    %c0_22 = arith.constant 0 : index
    %c0_23 = arith.constant 0 : index
    %57 = vector.load %arg10[%c0_22, %c0_23] : memref<8x8xf32, #tpu.memory_space<vmem>>, vector<8x8xf32>
    tpu.vector_store %arg10[%c0_22, %c0_23], %56 {strides = array<i32>} : memref<8x8xf32, #tpu.memory_space<vmem>>, vector<8x8xf32>,
    return
  }
  func.func @transform_0(%arg0: i32) -> (i32, i32) {
    %c0_i32 = arith.constant 0 : i32
    %c0_i32_0 = arith.constant 0 : i32
    return %arg0, %c0_i32 : i32, i32
  }
  func.func @transform_1(%arg0: i32) -> (i32, i32) {
    %c0_i32 = arith.constant 0 : i32
    %c0_i32_0 = arith.constant 0 : i32
    %c0_i32_1 = arith.constant 0 : i32
    return %c0_i32, %c0_i32_0 : i32, i32
  }
  func.func @transform_2(%arg0: i32) -> (i32, i32) {
    %c0_i32 = arith.constant 0 : i32
    %c0_i32_0 = arith.constant 0 : i32
    %c0_i32_1 = arith.constant 0 : i32
    return %c0_i32, %c0_i32_0 : i32, i32
  }
  func.func @transform_3(%arg0: i32) -> (i32, i32) {
    %c0_i32 = arith.constant 0 : i32
    %c0_i32_0 = arith.constant 0 : i32
    %c0_i32_1 = arith.constant 0 : i32
    return %c0_i32, %c0_i32_0 : i32, i32
  }
  func.func @transform_4(%arg0: i32) -> (i32, i32) {
    %c0_i32 = arith.constant 0 : i32
    %c0_i32_0 = arith.constant 0 : i32
    %c0_i32_1 = arith.constant 0 : i32
    return %c0_i32, %c0_i32_0 : i32, i32
  }
  func.func @transform_5(%arg0: i32) -> (i32, i32) {
    %c0_i32 = arith.constant 0 : i32
    %c0_i32_0 = arith.constant 0 : i32
    %c0_i32_1 = arith.constant 0 : i32
    return %c0_i32, %c0_i32_0 : i32, i32
  }
  func.func @transform_6(%arg0: i32) -> (i32, i32) {
    %c0_i32 = arith.constant 0 : i32
    %c0_i32_0 = arith.constant 0 : i32
    %c0_i32_1 = arith.constant 0 : i32
    return %c0_i32, %c0_i32_0 : i32, i32
  }
  func.func @transform_7(%arg0: i32) -> (i32, i32) {
    %c0_i32 = arith.constant 0 : i32
    %c0_i32_0 = arith.constant 0 : i32
    %c0_i32_1 = arith.constant 0 : i32
    return %c0_i32, %c0_i32_0 : i32, i32
  }
  func.func @transform_8(%arg0: i32) -> (i32, i32) {
    %c0_i32 = arith.constant 0 : i32
    %c0_i32_0 = arith.constant 0 : i32
    %c0_i32_1 = arith.constant 0 : i32
    return %c0_i32, %c0_i32_0 : i32, i32
  }
  func.func @transform_9(%arg0: i32) -> (i32, i32) {
    %c0_i32 = arith.constant 0 : i32
    %c0_i32_0 = arith.constant 0 : i32
    return %arg0, %c0_i32 : i32, i32
  }
}

</mosaic_0001>

<bundles_post_ra>
// kernel: tpu_custom_call.1
= control target key start
LH: loop header
LB: loop body
LE: loop exit
PB: predicated region body
PF: predicated region fallthrough
CT: control target
= control target key end

     0   :  { %14 = vsyncpa [#allocation3], 0  ;;  %s907_s0 = inlined_call_operand.vmem [shape: f32[8,5], index: 0, kind: input, shape index: {}]   ;;  %s908_s1 = inlined_call_operand.hbm [shape: f32[5,128], index: 1, kind: input, shape index: {}]   ;;  %s909_s2 = inlined_call_operand.vmem [shape: f32[1,128], index: 2, kind: input, shape index: {}]   ;;  %s910_s3 = inlined_call_operand.vmem [shape: f32[128,128], index: 3, kind: input, shape index: {}]   ;;  %s911_s4 = inlined_call_operand.vmem [shape: f32[1,128], index: 4, kind: input, shape index: {}]   ;;  %s912_s5 = inlined_call_operand.vmem [shape: f32[128,64], index: 5, kind: input, shape index: {}]   ;;  %s913_s6 = inlined_call_operand.vmem [shape: f32[1,64], index: 6, kind: input, shape index: {}]   ;;  %s914_s7 = inlined_call_operand.vmem [shape: f32[64,128], index: 7, kind: input, shape index: {}]   ;;  %s915_s8 = inlined_call_operand.vmem [shape: f32[1,8], index: 8, kind: input, shape index: {}]   ;;  %s916_s9 = inlined_call_operand.hbm [shape: f32[8,8], index: 9, kind: output, shape index: {}]  }
   0x1   :  { %15 = vsyncpa [#allocation4], 0  ;;  %s662_s30 = smov [#allocation2]   ;;  %s614_s13 = scalar_lea.hbm %s908_s1, 128 }
   0x2   :  { %s24_s10 = sshll.u32 %s662_s30, 4  ;;  %p615_p0 = scmp.ne.s32.totalorder %s908_s1, %s614_s13  ;;  %s25_s10 = int_to_ptr.vmem [resolvable:$true] %s24_s10 }
   0x3   :  { %p618_p1 = scmp.lt.u32.totalorder %s614_s13, %s908_s1 }
   0x5   :  { %p620_p2 = pnand %p618_p1, %p615_p0 }
   0x7   :  { %623 = shalt.err (!%p620_p2)
}
   0x8   :  { %s624_s18 = scalar_lea.vmem %s25_s10, 128  ;;  %p629_p4 = scmp.lt.s32.totalorder %s25_s10, %s25_s10 }
   0x9   :  { %p625_p3 = scmp.ne.s32.totalorder %s25_s10, %s624_s18  ;;  %p630_p5 = scmp.lt.s32.totalorder %s624_s18, %s624_s18 }
   0xb   :  { %p631_p6 = por %p630_p5, %p629_p4 }
   0xd   :  { %p632_p7 = pnand %p631_p6, %p625_p3 }
   0xf   :  { %635 = shalt.err (!%p632_p7)
}
  0x10   :  { %27 = dma.hbm_to_vmem [thread:$0]  %s908_s1, 128, %s25_s10, [#allocation3]  }
  0x11   :  { %658 = dma.done.wait [#allocation3], 128  }
  0x12   :  { %659 = vsyncadd [#allocation3], 4294967168  ;;  %v663_v0 = vmov 0   ;;  %v664_v1 = vmov 2   ;;  %v665_v2 = vmov 0.0|0.0   ;;  %v45_v3 = vld [vmem:[%s907_s0] sm:$0xff]  ;;  %v59_v53 = vlaneseq }
  0x13   :  { %608 = vset.pattern.permute.xlu0 %v663_v0  ;;  %610 = vset.pattern.permute.xlu1 %v664_v1  ;;  %v106_v4 = vld [vmem:[%s910_s3] sm:$0xff]  ;;  %v107_v5 = vld [vmem:[%s910_s3 + $0x8] sm:$0xff]  ;;  %v108_v7 = vld [vmem:[%s910_s3 + $0x10] sm:$0xff]  ;;  %v666_v12 = vmov 1   ;;  %v667_v13 = vmov 3   ;;  %v668_v17 = vmov 4  }
  0x14   :  { %538 = vmatprep.subr.bf16.mxu0 %v665_v2  ;;  %562 = vmatprep.subr.bf16.mxu1 %v665_v2  ;;  %v539_v6 = vpack.c.bf16 %v107_v5, %v106_v4  ;;  %v109_v8 = vld [vmem:[%s910_s3 + $0x18] sm:$0xff]  ;;  %v110_v10 = vld [vmem:[%s910_s3 + $0x20] sm:$0xff]  ;;  %v111_v11 = vld [vmem:[%s910_s3 + $0x28] sm:$0xff]  ;;  %vm669_vm0 = vmmov 0   ;;  %v670_v24 = vmov 0.0   ;;  %v60_v54 = vshrl.u32 %v59_v53, 7 }
  0x15   :  { %56 = vperm.xlu0 %608, %v45_v3   ;;  %76 = vperm.xlu1 %610, %v45_v3   ;;  %v542_v9 = vpack.c.bf16 %v109_v8, %v108_v7  ;;  %v545_v14 = vpack.c.bf16 %v111_v11, %v110_v10  ;;  %v112_v15 = vld [vmem:[%s910_s3 + $0x30] sm:$0xff]  ;;  %v113_v16 = vld [vmem:[%s910_s3 + $0x38] sm:$0xff]  ;;  %v114_v19 = vld [vmem:[%s910_s3 + $0x40] sm:$0xff]  ;;  %vm302_vm1 = vcmask 523264   ;;  %s671_s14 = smov [#allocation5]   ;;  %vm384_vm2 = vcmask 64512  }
  0x16   :  { %540 = vmatpush3.bf16.msra.mxu0 %v539_v6  ;;  %v548_v18 = vpack.c.bf16 %v113_v16, %v112_v15  ;;  %v115_v20 = vld [vmem:[%s910_s3 + $0x48] sm:$0xff]  ;;  %v116_v22 = vld [vmem:[%s910_s3 + $0x50] sm:$0xff]  ;;  %v117_v23 = vld [vmem:[%s910_s3 + $0x58] sm:$0xff]  ;;  %481 = vmatprep.mubr.msk.f32.mxu0 %vm669_vm0, %v670_v24  ;;  %v61_v55 = vsub.s32 0, %v60_v54  ;;  %v71_v58 = vsub.s32 1, %v60_v54  ;;  %v81_v60 = vsub.s32 2, %v60_v54 }
  0x17   :  { %541 = vmatprep.subr.bf16.mxu0 %v665_v2  ;;  %v551_v21 = vpack.c.bf16 %v115_v20, %v114_v19  ;;  %516 = vmatprep.mubr.msk.f32.mxu1 %vm669_vm0, %v670_v24  ;;  %v200_v25 = vld [vmem:[%s912_s5] sm:$0xff]  ;;  %v201_v26 = vld [vmem:[%s912_s5 + $0x8] sm:$0xff]  ;;  %v202_v27 = vld [vmem:[%s912_s5 + $0x10] sm:$0xff]  ;;  %v554_v28 = vpack.c.bf16 %v117_v23, %v116_v22  ;;  %v91_v0 = vsub.s32 3, %v60_v54 }
  0x18   :  { %v563_v29 = vpack.c.bf16 %v201_v26, %v200_v25  ;;  %v203_v30 = vld [vmem:[%s912_s5 + $0x18] sm:$0xff]  ;;  %v118_v31 = vld [vmem:[%s910_s3 + $0x60] sm:$0xff]  ;;  %v119_v32 = vld [vmem:[%s910_s3 + $0x68] sm:$0xff] }
  0x19   :  { %609 = vset.pattern.permute.xlu0 %v666_v12  ;;  %611 = vset.pattern.permute.xlu1 %v667_v13  ;;  %v566_v33 = vpack.c.bf16 %v203_v30, %v202_v27  ;;  %v204_v34 = vld [vmem:[%s912_s5 + $0x20] sm:$0xff]  ;;  %v205_v35 = vld [vmem:[%s912_s5 + $0x28] sm:$0xff]  ;;  %v557_v36 = vpack.c.bf16 %v119_v32, %v118_v31  ;;  %v120_v37 = vld [vmem:[%s910_s3 + $0x70] sm:$0xff] }
  0x1a   :  { %66 = vperm.xlu0 %609, %v45_v3   ;;  %86 = vperm.xlu1 %611, %v45_v3   ;;  %v121_v38 = vld [vmem:[%s910_s3 + $0x78] sm:$0xff]  ;;  %v569_v39 = vpack.c.bf16 %v205_v35, %v204_v34  ;;  %v206_v40 = vld [vmem:[%s912_s5 + $0x30] sm:$0xff]  ;;  %v208_v44 = vld [vmem:[%s912_s5 + $0x40] sm:$0xff] }
  0x1b   :  { %543 = vmatpush3.bf16.msra.mxu0 %v542_v9  ;;  %564 = vmatpush3.bf16.msra.mxu1 %v563_v29  ;;  %v207_v41 = vld [vmem:[%s912_s5 + $0x38] sm:$0xff]  ;;  %v560_v42 = vpack.c.bf16 %v121_v38, %v120_v37  ;;  %v209_v45 = vld [vmem:[%s912_s5 + $0x48] sm:$0xff]  ;;  %v210_v47 = vld [vmem:[%s912_s5 + $0x50] sm:$0xff] }
  0x1c   :  { %544 = vmatprep.subr.bf16.mxu0 %v665_v2  ;;  %565 = vmatprep.subr.bf16.mxu1 %v665_v2  ;;  %v572_v43 = vpack.c.bf16 %v207_v41, %v206_v40  ;;  %v575_v46 = vpack.c.bf16 %v209_v45, %v208_v44  ;;  %v211_v48 = vld [vmem:[%s912_s5 + $0x58] sm:$0xff]  ;;  %v212_v50 = vld [vmem:[%s912_s5 + $0x60] sm:$0xff]  ;;  %v213_v51 = vld [vmem:[%s912_s5 + $0x68] sm:$0xff] }
  0x1d   :  { %v578_v49 = vpack.c.bf16 %v211_v48, %v210_v47  ;;  %v581_v52 = vpack.c.bf16 %v213_v51, %v212_v50  ;;  %v46_v56 = vld [vmem:[#allocation2] sm:$0x1f]  ;;  %v214_v20 = vld [vmem:[%s912_s5 + $0x70] sm:$0xff]  ;;  %v295_v25 = vld [vmem:[%s914_s7 + $0x8] sm:$0xff] }
  0x1e   :  { %612 = vset.pattern.permute.xlu1 %v668_v17  ;;  %613 = vset.pattern.permute.xlu0 %v668_v17  ;;  %v62_v57 = vrot.slane %v46_v56, %v61_v55  ;;  %v72_v63 = vrot.slane %v46_v56, %v71_v58  ;;  %v401_v1 = vld [vmem:[%s909_s2] ss:$0 sm:$0xff]  ;;  %v82_v4 = vrot.slane %v46_v56, %v81_v60  ;;  %v297_v27 = vld [vmem:[%s914_s7 + $0x18] sm:$0xff]  ;;  %v299_v30 = vld [vmem:[%s914_s7 + $0x28] sm:$0xff]  ;;  %s392_s2 = sshll.u32 %s671_s14, 4  ;;  %s393_s2 = int_to_ptr.vmem [resolvable:$true] %s392_s2 }
  0x1f   :  { %96 = vperm.xlu1 %612, %v45_v3   ;;  %546 = vmatpush3.bf16.msra.mxu0 %v545_v14  ;;  %v101_v3 = vsub.s32 4, %v60_v54  ;;  %v92_v9 = vrot.slane %v46_v56, %v91_v0  ;;  %v294_v23 = vld [vmem:[%s914_s7] sm:$0xff]  ;;  %v300_v37 = vld [vmem:[%s914_s7 + $0x30] sm:$0xff]  ;;  %v301_v38 = vld [vmem:[%s914_s7 + $0x38] sm:$0xff]  ;;  %p641_p9 = scmp.lt.s32.totalorder %s393_s2, %s393_s2 }
  0x20   :  { %547 = vmatprep.subr.bf16.mxu0 %v665_v2  ;;  %567 = vmatpush3.bf16.msra.mxu1 %v566_v33  ;;  %v587_v26 = vpack.c.bf16 %v295_v25, %v294_v23  ;;  %v298_v29 = vld [vmem:[%s914_s7 + $0x20] sm:$0xff] }
  0x21   :  { %568 = vmatprep.subr.bf16.mxu1 %v665_v2  ;;  %v102_v10 = vrot.slane %v46_v56, %v101_v3  ;;  %v593_v31 = vpack.c.bf16 %v299_v30, %v298_v29  ;;  %v402_v32 = vld [vmem:[%s911_s4] ss:$0 sm:$0xff] }
  0x22   :  { %v405_v44 = vld [vmem:[%s915_s8] ss:$0 sm:$0xff] }
  0x23   :  { %549 = vmatpush3.bf16.msra.mxu0 %v548_v18 }
  0x24   :  { %550 = vmatprep.subr.bf16.mxu0 %v665_v2  ;;  %570 = vmatpush3.bf16.msra.mxu1 %v569_v39  ;;  %v596_v39 = vpack.c.bf16 %v301_v38, %v300_v37 }
  0x25   :  { %571 = vmatprep.subr.bf16.mxu1 %v665_v2 }
  0x27   :  { %552 = vmatpush3.bf16.msra.mxu0 %v551_v21  ;;  %v215_v21 = vld [vmem:[%s912_s5 + $0x78] sm:$0xff] }
  0x28   :  { %553 = vmatprep.subr.bf16.mxu0 %v665_v2  ;;  %573 = vmatpush3.bf16.msra.mxu1 %v572_v43  ;;  %v584_v22 = vpack.c.bf16 %v215_v21, %v214_v20 }
  0x29   :  { %574 = vmatprep.subr.bf16.mxu1 %v665_v2 }
  0x2b   :  { %555 = vmatpush3.bf16.msra.mxu0 %v554_v28 }
  0x2c   :  { %556 = vmatprep.subr.bf16.mxu0 %v665_v2  ;;  %576 = vmatpush3.bf16.msra.mxu1 %v575_v46 }
  0x2d   :  { %577 = vmatprep.subr.bf16.mxu1 %v665_v2 }
  0x2f   :  { %558 = vmatpush3.bf16.msra.mxu0 %v557_v36 }
  0x30   :  { %559 = vmatprep.subr.bf16.mxu0 %v665_v2  ;;  %579 = vmatpush3.bf16.msra.mxu1 %v578_v49 }
  0x31   :  { %580 = vmatprep.subr.bf16.mxu1 %v665_v2 }
  0x33   :  { %561 = vmatpush3.bf16.msra.mxu0 %v560_v42 }
  0x34   :  { %586 = vmatprep.subr.bf16.mxu0 %v665_v2  ;;  %582 = vmatpush3.bf16.msra.mxu1 %v581_v52 }
  0x35   :  { %583 = vmatprep.subr.bf16.mxu1 %v665_v2 }
  0x38   :  { %585 = vmatpush3.bf16.msra.mxu1 %v584_v22 }
  0x94   :  { %v57_v59 = vpop.permute.xlu0 %56  ;;  %v77_v61 = vpop.permute.xlu1 %76 }
  0x95   :  { %v63_v62 = vmul.f32 %v62_v57, %v57_v59  ;;  %v83_v11 = vmul.f32 %v82_v4, %v77_v61 }
  0x97   :  { %v64_v7 = vadd.f32 %v401_v1, %v63_v62 }
  0x99   :  { %v67_v5 = vpop.permute.xlu0 %66  ;;  %v87_v6 = vpop.permute.xlu1 %86 }
  0x9a   :  { %v73_v8 = vmul.f32 %v72_v63, %v67_v5  ;;  %v93_v14 = vmul.f32 %v92_v9, %v87_v6 }
  0x9c   :  { %v74_v12 = vadd.f32 %v73_v8, %v64_v7 }
  0x9e   :  { %v84_v13 = vadd.f32 %v83_v11, %v74_v12  ;;  %v97_v15 = vpop.permute.xlu1 %96 }
  0x9f   :  { %v103_v16 = vmul.f32 %v102_v10, %v97_v15 }
  0xa0   :  { %v94_v17 = vadd.f32 %v93_v14, %v84_v13 }
  0xa2   :  { %v104_v18 = vadd.f32 %v103_v16, %v94_v17 }
  0xa4   :  { %v105_v19 = vmax.f32 %v104_v18, 0.0 }
  0xa6   :  { %482 = vmatmul.mubr.f32.vlgmr.msra.gmra.mrb[0].mxu0 %v105_v19 }
  0xa7   :  { %535 = vmatprep.mubr.msk.f32.mxu0 %vm669_vm0, %v670_v24  ;;  %v296_v24 = vld [vmem:[%s914_s7 + $0x10] sm:$0xff]  ;;  %588 = vmatpush3.bf16.msra.mxu0 %v587_v26  ;;  %s636_s7 = scalar_lea.vmem %s393_s2, 128 }
  0xa8   :  { %v590_v28 = vpack.c.bf16 %v297_v27, %v296_v24  ;;  %589 = vmatprep.subr.bf16.mxu0 %v665_v2  ;;  %p637_p8 = scmp.ne.s32.totalorder %s393_s2, %s636_s7  ;;  %p642_p10 = scmp.lt.s32.totalorder %s636_s7, %s636_s7 }
  0xaa   :  { %p643_p11 = por %p642_p10, %p641_p9 }
  0xab   :  { %591 = vmatpush3.bf16.msra.mxu0 %v590_v28 }
  0xac   :  { %592 = vmatprep.subr.bf16.mxu0 %v665_v2  ;;  %p644_p12 = pnand %p643_p11, %p637_p8 }
  0xaf   :  { %594 = vmatpush3.bf16.msra.mxu0 %v593_v31 }
  0xb0   :  { %595 = vmatprep.subr.bf16.mxu0 %v665_v2  ;;  %v403_v2 = vld [vmem:[%s913_s6] ss:$0 sm:$0xff] }
  0xb3   :  { %597 = vmatpush3.bf16.msra.mxu0 %v596_v39 }
 0x179   :  { %v195_v33 = vpop.f32.mrb[0].mxu0 }
 0x17a   :  { %v196_v34 = vadd.f32 %v402_v32, %v195_v33  ;;  %v483_v35 = vpop.f32.mrb[1].mxu0 }
 0x17c   :  { %v199_v36 = vmax.f32 %v196_v34, 0.0 }
 0x17e   :  { %517 = vmatmul.mubr.f32.vlgmr.msra.gmra.mrb[0].mxu1 %v199_v36 }
 0x251   :  { %v289_v40 = vpop.f32.mrb[0].mxu1 }
 0x252   :  { %v290_v41 = vadd.f32 %v403_v2, %v289_v40  ;;  %v518_v42 = vpop.f32.mrb[1].mxu1 }
 0x254   :  { %v293_v43 = vmax.f32 %v290_v41, 0.0 }
 0x256   :  { %536 = vmatmul.mubr.msk.f32.vlgmr.msra.gmra.mrb[2].mxu0 %vm302_vm1, %v293_v43 }
 0x329   :  { %v372_v45 = vpop.f32.mrb[2].mxu0 }
 0x32a   :  { %v383_v46 = vadd.f32 %v405_v44, %v372_v45  ;;  %v537_v47 = vpop.f32.mrb[3].mxu0 }
 0x32c   :  { %385 = vst.msk [vmem:[#allocation5] sm:$0xff] %vm384_vm2, %v383_v46 }
 0x32d   :  { %647 = shalt.err (!%p644_p12)
}
 0x32e   :  { %s648_s16 = scalar_lea.hbm %s916_s9, 128 }
 0x32f   :  { %p649_p13 = scmp.ne.s32.totalorder %s916_s9, %s648_s16  ;;  %p652_p0 = scmp.lt.u32.totalorder %s648_s16, %s916_s9 }
 0x331   :  { %p654_p1 = pnand %p652_p0, %p649_p13 }
 0x333   :  { %657 = shalt.err (!%p654_p1)
}
 0x334   :  { %395 = dma.vmem_to_hbm [thread:$0]  %s393_s2, 128, %s916_s9, [#allocation4]  }
 0x335   :  { %660 = dma.done.wait [#allocation4], 128  }
 0x336   :  { %661 = vsyncadd [#allocation4], 4294967168 }
 0x337   :  { %399 = vsyncpa [#allocation3], 1 }
 0x338   :  { %400 = vsyncpa [#allocation4], 1 }

</bundles_post_ra>
